<compile_context>
chip_gen: v5e
topology: v5e:2x2
jax: 0.10.0
libtpu: 0.0.40
codegen_flags: <defaults>
</compile_context>

<pallas_src>
import functools
import math

import jax
import jax.numpy as jnp
from jax.experimental import pallas as pl
from jax.experimental.pallas import tpu as pltpu


def _round_up(x, m):
    return ((x + m - 1) // m) * m


def self_attention_kernel(x_ref,
                          n1w_ref, n1b_ref,
                          wqkv_ref, bqkv_ref,
                          wf_ref, bf_ref,
                          n2w_ref, n2b_ref,
                          w1_ref, b1_ref,
                          w2_ref, b2_ref,
                          o_ref,
                          *, nheads, head_dim, bt, seq, dim, dim_pad):
    rows = bt * seq
    x = x_ref[...].reshape(rows, dim_pad).astype(jnp.float32)   # (rows, dim_pad)
    res0 = x

    # Mask of the `dim` real columns inside the 128-padded lane dimension.
    lane_mask = jax.lax.broadcasted_iota(jnp.int32, (1, dim_pad), 1) < dim
    inv_dim = 1.0 / dim

    def layernorm(v, g, b, eps=1e-5):
        # Masked LN: statistics over the `dim` real columns only; gamma/beta are
        # zero-padded so padded columns come out exactly 0.
        vm = jnp.where(lane_mask, v, 0.0)
        mu = jnp.sum(vm, axis=-1, keepdims=True) * inv_dim
        d = jnp.where(lane_mask, v - mu, 0.0)
        var = jnp.sum(d * d, axis=-1, keepdims=True) * inv_dim
        return d * jax.lax.rsqrt(var + eps) * g + b

    # --- pre-norm (f32, VPU) ---
    xn = layernorm(x, n1w_ref[...], n1b_ref[...])

    # --- fused QKV projection: one lane-dense MXU matmul, bf16 operands, f32 acc
    # (query scale already folded into wqkv/bqkv on the host) ---
    qkv = jnp.dot(xn.astype(jnp.bfloat16), wqkv_ref[...],
                  preferred_element_type=jnp.float32) + bqkv_ref[...]

    # --- multi-head attention, batched over the batch-tile dim, with the output
    # projection folded per head (no VMEM scratch round-trip) ---
    attn = jnp.zeros((rows, dim_pad), jnp.float32)
    for h in range(nheads):                                     # static, small unroll
        q0 = h * head_dim
        k0 = dim + h * head_dim
        v0 = 2 * dim + h * head_dim
        qh = qkv[:, q0:q0 + head_dim].reshape(bt, seq, head_dim).astype(jnp.bfloat16)
        kh = qkv[:, k0:k0 + head_dim].reshape(bt, seq, head_dim).astype(jnp.bfloat16)
        vh = qkv[:, v0:v0 + head_dim].reshape(bt, seq, head_dim).astype(jnp.bfloat16)
        s = jnp.einsum('bqd,bkd->bqk', qh, kh,
                       preferred_element_type=jnp.float32)      # (bt, n, n) f32
        s = s - jnp.max(s, axis=-1, keepdims=True)
        e = jnp.exp(s)
        p = e * pl.reciprocal(jnp.sum(e, axis=-1, keepdims=True), approx=True)
        oh = jnp.einsum('bqk,bkd->bqd', p.astype(jnp.bfloat16), vh,
                        preferred_element_type=jnp.float32)     # (bt, n, hd)
        wf_h = wf_ref[q0:q0 + head_dim, :].astype(jnp.bfloat16)  # (hd, dim_pad)
        attn = attn + jnp.dot(oh.reshape(rows, head_dim).astype(jnp.bfloat16),
                              wf_h, preferred_element_type=jnp.float32)

    # --- output projection bias + residual ---
    out = res0 + attn + bf_ref[...]
    res1 = out

    # --- second norm + MLP + residual (Dropout is identity in eval mode) ---
    on = layernorm(out, n2w_ref[...], n2b_ref[...])
    h1 = jnp.dot(on.astype(jnp.bfloat16), w1_ref[...],
                 preferred_element_type=jnp.float32) + b1_ref[...]
    h1 = jnp.maximum(h1, 0.0)                                   # ReLU
    mlp = jnp.dot(h1.astype(jnp.bfloat16), w2_ref[...],
                  preferred_element_type=jnp.float32) + b2_ref[...]
    out = res1 + mlp

    o_ref[...] = out.reshape(bt, seq, dim_pad).astype(o_ref.dtype)


def _pick_batch_tile(bsz, seq, max_rows=2048):
    """Batch-tile size: big tiles (amortize ~0.35us/step + feed the MXU), but
    keep >=2 grid steps when bsz >= 2 (v7x megacore) and make rows a multiple
    of 256 when large enough (256-wide MXU on v6e/v7x)."""
    bt = max(1, min(bsz, max_rows // max(1, seq)))
    if bsz >= 2:
        bt = min(bt, -(-bsz // 2))        # at least 2 grid steps
    if bt * seq >= 256:
        unit = 256 // math.gcd(seq, 256)
        bt = max(unit, (bt // unit) * unit)
    return max(1, bt)


def self_attention_pallas(x, params, nheads, mm_dtype=jnp.bfloat16):
    bsz, seq, dim = x.shape
    assert dim % nheads == 0, "dim must be divisible by nheads"
    head_dim = dim // nheads
    scale = 1.0 / math.sqrt(head_dim)

    # Lane-dense padded sizes.
    dim_pad = _round_up(dim, 128)
    qkv_pad = _round_up(3 * dim, 128)
    hid_pad = _round_up(2 * dim, 128)

    bt = _pick_batch_tile(bsz, seq)
    n_steps = -(-bsz // bt)
    bsz_pad = n_steps * bt
    rows = bt * seq

    # Zero-pad batch (to a bt multiple) and feature dim (to 128).
    if bsz_pad != bsz or dim_pad != dim:
        xp = jnp.pad(x, ((0, bsz_pad - bsz), (0, 0), (0, dim_pad - dim)))
    else:
        xp = x

    f32 = jnp.float32

    def pad_mat(m, r, c, dtype):
        m = m.astype(f32)
        return jnp.pad(m, ((0, r - m.shape[0]), (0, c - m.shape[1]))).astype(dtype)

    def pad_row(v, c):
        v = v.astype(f32).reshape(1, -1)
        return jnp.pad(v, ((0, 0), (0, c - v.shape[1])))

    # Fused, pre-transposed (in, out) QKV weight with the query scale folded in;
    # all padding columns/rows are zero so padded lanes stay zero end-to-end.
    wqkv = pad_mat(jnp.concatenate([params["wq"].T * scale,
                                    params["wk"].T,
                                    params["wv"].T], axis=1),
                   dim_pad, qkv_pad, mm_dtype)
    bqkv = pad_row(jnp.concatenate([params["bq"] * scale,
                                    params["bk"],
                                    params["bv"]]), qkv_pad)
    # wf stays f32: it is sliced per head along sublanes inside the kernel.
    wf = pad_mat(params["wf"].T, dim, dim_pad, f32)
    bf = pad_row(params["bf"], dim_pad)
    w1 = pad_mat(params["w1"].T, dim_pad, hid_pad, mm_dtype)
    b1 = pad_row(params["b1"], hid_pad)
    w2 = pad_mat(params["w2"].T, hid_pad, dim_pad, mm_dtype)
    b2 = pad_row(params["b2"], dim_pad)

    inputs = [
        xp,
        pad_row(params["norm1_w"], dim_pad), pad_row(params["norm1_b"], dim_pad),
        wqkv, bqkv,
        wf, bf,
        pad_row(params["norm2_w"], dim_pad), pad_row(params["norm2_b"], dim_pad),
        w1, b1, w2, b2,
    ]

    # Input/output blocks are exact (8,128)-tiled, lane-dense slabs.
    x_spec = pl.BlockSpec((bt, seq, dim_pad), lambda b: (b, 0, 0))
    # Weights/biases: full-array blocks, constant index map (resident in VMEM).
    param_specs = [pl.BlockSpec(a.shape, lambda b: (0, 0)) for a in inputs[1:]]

    kernel = functools.partial(self_attention_kernel, nheads=nheads,
                               head_dim=head_dim, bt=bt, seq=seq,
                               dim=dim, dim_pad=dim_pad)

    # VMEM budget: resident params (x2 pipeline copies), double-buffered in/out
    # blocks, in-kernel f32 intermediates (x/res/xn/attn/out/on/... slabs + qkv
    # + hidden + per-head score blocks) + headroom.  Clamped to 48 MiB so it
    # always fits v7x's 64 MiB physical VMEM per TensorCore.
    param_bytes = sum(int(a.size) * a.dtype.itemsize for a in inputs[1:])
    block_bytes = rows * dim_pad * x.dtype.itemsize
    interm_bytes = rows * (8 * dim_pad + qkv_pad + hid_pad) * 4 + 2 * bt * seq * seq * 4
    vmem_limit = int(min(48 * 2**20,
                         max(16 * 2**20,
                             2 * param_bytes + 4 * block_bytes
                             + interm_bytes + 4 * 2**20)))

    out = pl.pallas_call(
        kernel,
        out_shape=jax.ShapeDtypeStruct((bsz_pad, seq, dim_pad), x.dtype),
        grid_spec=pltpu.PrefetchScalarGridSpec(
            num_scalar_prefetch=0,
            grid=(n_steps,),
            in_specs=[x_spec] + param_specs,
            out_specs=pl.BlockSpec((bt, seq, dim_pad), lambda b: (b, 0, 0)),
        ),
        compiler_params=pltpu.CompilerParams(
            dimension_semantics=("parallel",),
            vmem_limit_bytes=vmem_limit),
    )(*inputs)

    return out[:bsz, :, :dim]


def self_attention_ref(x, params, nheads):
    """Pure-JAX f32 reference mirroring the PyTorch forward (eval mode)."""
    bsz, n, dim = x.shape
    head_dim = dim // nheads

    def ln(v, g, b, eps=1e-5):
        mu = jnp.mean(v, axis=-1, keepdims=True)
        var = jnp.mean((v - mu) ** 2, axis=-1, keepdims=True)
        return (v - mu) / jnp.sqrt(var + eps) * g + b

    res = x
    xn = ln(x, params["norm1_w"], params["norm1_b"])
    q = xn @ params["wq"].T + params["bq"]
    k = xn @ params["wk"].T + params["bk"]
    v = xn @ params["wv"].T + params["bv"]
    q = q.reshape(bsz, n, nheads, head_dim).transpose(0, 2, 1, 3) / math.sqrt(head_dim)
    k = k.reshape(bsz, n, nheads, head_dim).transpose(0, 2, 3, 1)
    v = v.reshape(bsz, n, nheads, head_dim).transpose(0, 2, 1, 3)
    score = jax.nn.softmax(q @ k, axis=-1)
    out = (score @ v).transpose(0, 2, 1, 3).reshape(bsz, n, dim)
    out = out @ params["wf"].T + params["bf"]
    out = res + out
    res = out
    on = ln(out, params["norm2_w"], params["norm2_b"])
    h1 = jnp.maximum(on @ params["w1"].T + params["b1"], 0.0)
    mlp = h1 @ params["w2"].T + params["b2"]
    return res + mlp


def init_params(key, dim):
    """Deterministic parameter init (shapes match the nn.Module __init__)."""
    keys = jax.random.split(key, 12)

    def linear(kw, kb, fan_in, fan_out):
        bound = 1.0 / math.sqrt(fan_in)
        w = jax.random.uniform(kw, (fan_out, fan_in), jnp.float32, -bound, bound)
        b = jax.random.uniform(kb, (fan_out,), jnp.float32, -bound, bound)
        return w, b

    wq, bq = linear(keys[0], keys[1], dim, dim)
    wk, bk = linear(keys[2], keys[3], dim, dim)
    wv, bv = linear(keys[4], keys[5], dim, dim)
    wf, bf = linear(keys[6], keys[7], dim, dim)
    w1, b1 = linear(keys[8], keys[9], dim, 2 * dim)
    w2, b2 = linear(keys[10], keys[11], 2 * dim, dim)
    return {
        "norm1_w": jnp.ones((dim,), jnp.float32),
        "norm1_b": jnp.zeros((dim,), jnp.float32),
        "norm2_w": jnp.ones((dim,), jnp.float32),
        "norm2_b": jnp.zeros((dim,), jnp.float32),
        "wq": wq, "bq": bq, "wk": wk, "bk": bk, "wv": wv, "bv": bv,
        "wf": wf, "bf": bf, "w1": w1, "b1": b1, "w2": w2, "b2": b2,
    }


if __name__ == "__main__":
    bsz, n, dim, nheads = 2, 8, 32, 4
    root = jax.random.PRNGKey(0)
    kx, kp = jax.random.split(root)
    x = jax.random.normal(kx, (bsz, n, dim), dtype=jnp.float32)
    params = init_params(kp, dim)

    out = jax.block_until_ready(self_attention_pallas(x, params, nheads))
    ref = self_attention_ref(x, params, nheads)

    assert out.shape == (bsz, n, dim)
    # bf16 matmul operands + approx softmax reciprocal vs. a pure-f32 reference:
    # accumulation stays f32, so agreement is at bf16-operand level -> relaxed tol.
    assert jnp.allclose(out, ref, atol=1e-1, rtol=1e-1), "mismatch vs JAX reference"
    print("KERNEL_OK")
</pallas_src>

<mosaic_0001>
module attributes {stable_mosaic.version = 11 : i64} {
  func.func @self_attention_kernel(%arg0: i32, %arg1: memref<1x8x128xf32, #tpu.memory_space<vmem>>, %arg2: memref<1x128xf32, #tpu.memory_space<vmem>>, %arg3: memref<1x128xf32, #tpu.memory_space<vmem>>, %arg4: memref<128x128xbf16, #tpu.memory_space<vmem>>, %arg5: memref<1x128xf32, #tpu.memory_space<vmem>>, %arg6: memref<32x128xf32, #tpu.memory_space<vmem>>, %arg7: memref<1x128xf32, #tpu.memory_space<vmem>>, %arg8: memref<1x128xf32, #tpu.memory_space<vmem>>, %arg9: memref<1x128xf32, #tpu.memory_space<vmem>>, %arg10: memref<128x128xbf16, #tpu.memory_space<vmem>>, %arg11: memref<1x128xf32, #tpu.memory_space<vmem>>, %arg12: memref<128x128xbf16, #tpu.memory_space<vmem>>, %arg13: memref<1x128xf32, #tpu.memory_space<vmem>>, %arg14: memref<1x8x128xf32, #tpu.memory_space<vmem>>) attributes {dimension_semantics = [#tpu.dimension_semantics<parallel>], iteration_bounds = array<i64: 2>, scalar_prefetch = 0 : i64, scratch_operands = 0 : i64, tpu.core_type = #tpu.core_type<tc>, window_params = [{transform_indices = @transform_0, window_bounds = array<i64: 1, 8, 128>}, {pipeline_mode = #tpu.pipeline_mode<synchronous>, transform_indices = @transform_1, window_bounds = array<i64: 1, 128>}, {pipeline_mode = #tpu.pipeline_mode<synchronous>, transform_indices = @transform_2, window_bounds = array<i64: 1, 128>}, {pipeline_mode = #tpu.pipeline_mode<synchronous>, transform_indices = @transform_3, window_bounds = array<i64: 128, 128>}, {pipeline_mode = #tpu.pipeline_mode<synchronous>, transform_indices = @transform_4, window_bounds = array<i64: 1, 128>}, {pipeline_mode = #tpu.pipeline_mode<synchronous>, transform_indices = @transform_5, window_bounds = array<i64: 32, 128>}, {pipeline_mode = #tpu.pipeline_mode<synchronous>, transform_indices = @transform_6, window_bounds = array<i64: 1, 128>}, {pipeline_mode = #tpu.pipeline_mode<synchronous>, transform_indices = @transform_7, window_bounds = array<i64: 1, 128>}, {pipeline_mode = #tpu.pipeline_mode<synchronous>, transform_indices = @transform_8, window_bounds = array<i64: 1, 128>}, {pipeline_mode = #tpu.pipeline_mode<synchronous>, transform_indices = @transform_9, window_bounds = array<i64: 128, 128>}, {pipeline_mode = #tpu.pipeline_mode<synchronous>, transform_indices = @transform_10, window_bounds = array<i64: 1, 128>}, {pipeline_mode = #tpu.pipeline_mode<synchronous>, transform_indices = @transform_11, window_bounds = array<i64: 128, 128>}, {pipeline_mode = #tpu.pipeline_mode<synchronous>, transform_indices = @transform_12, window_bounds = array<i64: 1, 128>}, {transform_indices = @transform_13, window_bounds = array<i64: 1, 8, 128>}]} {
    %c0 = arith.constant 0 : index
    %c0_0 = arith.constant 0 : index
    %c0_1 = arith.constant 0 : index
    %0 = vector.load %arg1[%c0, %c0_0, %c0_1] : memref<1x8x128xf32, #tpu.memory_space<vmem>>, vector<1x8x128xf32>
    %1 = vector.shape_cast %0 : vector<1x8x128xf32> to vector<8x128xf32>
    %2 = tpu.iota {dimensions = array<i32: 1>} : vector<1x128xi32>
    %c32_i32 = arith.constant 32 : i32
    %3 = vector.broadcast %c32_i32 : i32 to vector<1x128xi32>
    %4 = arith.cmpi slt, %2, %3 : vector<1x128xi32>
    %c0_2 = arith.constant 0 : index
    %c0_3 = arith.constant 0 : index
    %5 = vector.load %arg2[%c0_2, %c0_3] : memref<1x128xf32, #tpu.memory_space<vmem>>, vector<1x128xf32>
    %c0_4 = arith.constant 0 : index
    %c0_5 = arith.constant 0 : index
    %6 = vector.load %arg3[%c0_4, %c0_5] : memref<1x128xf32, #tpu.memory_space<vmem>>, vector<1x128xf32>
    %cst = arith.constant 0.000000e+00 : f32
    %7 = vector.shape_cast %4 : vector<1x128xi1> to vector<1x128xi1>
    %8 = vector.broadcast %7 : vector<1x128xi1> to vector<8x128xi1>
    %9 = vector.broadcast %cst : f32 to vector<8x128xf32>
    %10 = arith.select %8, %1, %9 : vector<8x128xi1>, vector<8x128xf32>
    %cst_6 = arith.constant dense<0.000000e+00> : vector<8xf32>
    %11 = vector.multi_reduction <add>, %10, %cst_6 [1] : vector<8x128xf32> to vector<8xf32>
    %12 = vector.shape_cast %11 : vector<8xf32> to vector<8x1xf32>
    %cst_7 = arith.constant 3.125000e-02 : f32
    %13 = vector.broadcast %cst_7 : f32 to vector<8x1xf32>
    %14 = arith.mulf %12, %13 : vector<8x1xf32>
    %15 = vector.broadcast %14 : vector<8x1xf32> to vector<8x128xf32>
    %16 = arith.subf %1, %15 : vector<8x128xf32>
    %cst_8 = arith.constant 0.000000e+00 : f32
    %17 = vector.shape_cast %4 : vector<1x128xi1> to vector<1x128xi1>
    %18 = vector.broadcast %17 : vector<1x128xi1> to vector<8x128xi1>
    %19 = vector.broadcast %cst_8 : f32 to vector<8x128xf32>
    %20 = arith.select %18, %16, %19 : vector<8x128xi1>, vector<8x128xf32>
    %21 = arith.mulf %20, %20 : vector<8x128xf32>
    %cst_9 = arith.constant dense<0.000000e+00> : vector<8xf32>
    %22 = vector.multi_reduction <add>, %21, %cst_9 [1] : vector<8x128xf32> to vector<8xf32>
    %23 = vector.shape_cast %22 : vector<8xf32> to vector<8x1xf32>
    %cst_10 = arith.constant 3.125000e-02 : f32
    %24 = vector.broadcast %cst_10 : f32 to vector<8x1xf32>
    %25 = arith.mulf %23, %24 : vector<8x1xf32>
    %cst_11 = arith.constant 9.99999974E-6 : f32
    %26 = vector.broadcast %cst_11 : f32 to vector<8x1xf32>
    %27 = arith.addf %25, %26 : vector<8x1xf32>
    %28 = math.rsqrt %27 : vector<8x1xf32>
    %29 = vector.broadcast %28 : vector<8x1xf32> to vector<8x128xf32>
    %30 = arith.mulf %20, %29 : vector<8x128xf32>
    %31 = vector.broadcast %5 : vector<1x128xf32> to vector<8x128xf32>
    %32 = arith.mulf %30, %31 : vector<8x128xf32>
    %33 = vector.broadcast %6 : vector<1x128xf32> to vector<8x128xf32>
    %34 = arith.addf %32, %33 : vector<8x128xf32>
    %35 = arith.truncf %34 : vector<8x128xf32> to vector<8x128xbf16>
    %c0_12 = arith.constant 0 : index
    %c0_13 = arith.constant 0 : index
    %36 = vector.load %arg4[%c0_12, %c0_13] : memref<128x128xbf16, #tpu.memory_space<vmem>>, vector<128x128xbf16>
    %cst_14 = arith.constant dense<0.000000e+00> : vector<8x128xf32>
    %37 = tpu.matmul %35, %36, %cst_14 {dimension_numbers = #tpu.dot_dimension_numbers<[1], [0], [0], [1], [0, 0, 1, 1], [], []>} : vector<8x128xbf16>, vector<128x128xbf16>, vector<8x128xf32> -> vector<8x128xf32>
    %c0_15 = arith.constant 0 : index
    %c0_16 = arith.constant 0 : index
    %38 = vector.load %arg5[%c0_15, %c0_16] : memref<1x128xf32, #tpu.memory_space<vmem>>, vector<1x128xf32>
    %39 = vector.broadcast %38 : vector<1x128xf32> to vector<8x128xf32>
    %40 = arith.addf %37, %39 : vector<8x128xf32>
    %cst_17 = arith.constant 0.000000e+00 : f32
    %41 = vector.broadcast %cst_17 : f32 to vector<8x128xf32>
    %42 = vector.extract_strided_slice %40 {offsets = [0, 0], sizes = [8, 8], strides = [1, 1]} : vector<8x128xf32> to vector<8x8xf32>
    %43 = vector.shape_cast %42 : vector<8x8xf32> to vector<1x8x8xf32>
    %44 = arith.truncf %43 : vector<1x8x8xf32> to vector<1x8x8xbf16>
    %45 = vector.extract_strided_slice %40 {offsets = [0, 32], sizes = [8, 8], strides = [1, 1]} : vector<8x128xf32> to vector<8x8xf32>
    %46 = vector.shape_cast %45 : vector<8x8xf32> to vector<1x8x8xf32>
    %47 = arith.truncf %46 : vector<1x8x8xf32> to vector<1x8x8xbf16>
    %48 = vector.extract_strided_slice %40 {offsets = [0, 64], sizes = [8, 8], strides = [1, 1]} : vector<8x128xf32> to vector<8x8xf32>
    %49 = vector.shape_cast %48 : vector<8x8xf32> to vector<1x8x8xf32>
    %50 = arith.truncf %49 : vector<1x8x8xf32> to vector<1x8x8xbf16>
    "tpu.trace_start"() <{level = 10 : i32, message = "bqd,bkd->bqk"}> : () -> ()
    %cst_18 = arith.constant dense<0.000000e+00> : vector<1x8x8xf32>
    %51 = tpu.matmul %44, %47, %cst_18 {dimension_numbers = #tpu.dot_dimension_numbers<[2], [2], [1], [1], [0, 0, 0, 1, 1, 1], [0], [0]>} : vector<1x8x8xbf16>, vector<1x8x8xbf16>, vector<1x8x8xf32> -> vector<1x8x8xf32>
    "tpu.trace_stop"() : () -> ()
    %cst_19 = arith.constant dense<0xFF800000> : vector<1x8xf32>
    %52 = vector.multi_reduction <maximumf>, %51, %cst_19 [2] : vector<1x8x8xf32> to vector<1x8xf32>
    %53 = vector.shape_cast %52 : vector<1x8xf32> to vector<1x8x1xf32>
    %54 = vector.broadcast %53 : vector<1x8x1xf32> to vector<1x8x8xf32>
    %55 = arith.subf %51, %54 : vector<1x8x8xf32>
    %56 = math.exp %55 : vector<1x8x8xf32>
    %cst_20 = arith.constant dense<0.000000e+00> : vector<1x8xf32>
    %57 = vector.multi_reduction <add>, %56, %cst_20 [2] : vector<1x8x8xf32> to vector<1x8xf32>
    %58 = vector.shape_cast %57 : vector<1x8xf32> to vector<1x8x1xf32>
    %59 = tpu.reciprocal %58 {approx = true} : vector<1x8x1xf32> -> vector<1x8x1xf32>
    %60 = vector.broadcast %59 : vector<1x8x1xf32> to vector<1x8x8xf32>
    %61 = arith.mulf %56, %60 : vector<1x8x8xf32>
    %62 = arith.truncf %61 : vector<1x8x8xf32> to vector<1x8x8xbf16>
    "tpu.trace_start"() <{level = 10 : i32, message = "bqk,bkd->bqd"}> : () -> ()
    %cst_21 = arith.constant dense<0.000000e+00> : vector<1x8x8xf32>
    %63 = tpu.matmul %62, %50, %cst_21 {dimension_numbers = #tpu.dot_dimension_numbers<[2], [1], [1], [2], [0, 0, 0, 1, 1, 2], [0], [0]>} : vector<1x8x8xbf16>, vector<1x8x8xbf16>, vector<1x8x8xf32> -> vector<1x8x8xf32>
    "tpu.trace_stop"() : () -> ()
    %c0_22 = arith.constant 0 : index
    %c0_23 = arith.constant 0 : index
    %64 = vector.load %arg6[%c0_22, %c0_23] : memref<32x128xf32, #tpu.memory_space<vmem>>, vector<8x128xf32>
    %65 = arith.truncf %64 : vector<8x128xf32> to vector<8x128xbf16>
    %66 = vector.shape_cast %63 : vector<1x8x8xf32> to vector<8x8xf32>
    %67 = arith.truncf %66 : vector<8x8xf32> to vector<8x8xbf16>
    %cst_24 = arith.constant dense<0.000000e+00> : vector<8x128xf32>
    %68 = tpu.matmul %67, %65, %cst_24 {dimension_numbers = #tpu.dot_dimension_numbers<[1], [0], [0], [1], [0, 0, 1, 1], [], []>} : vector<8x8xbf16>, vector<8x128xbf16>, vector<8x128xf32> -> vector<8x128xf32>
    %69 = arith.addf %41, %68 : vector<8x128xf32>
    %70 = vector.extract_strided_slice %40 {offsets = [0, 8], sizes = [8, 8], strides = [1, 1]} : vector<8x128xf32> to vector<8x8xf32>
    %71 = vector.shape_cast %70 : vector<8x8xf32> to vector<1x8x8xf32>
    %72 = arith.truncf %71 : vector<1x8x8xf32> to vector<1x8x8xbf16>
    %73 = vector.extract_strided_slice %40 {offsets = [0, 40], sizes = [8, 8], strides = [1, 1]} : vector<8x128xf32> to vector<8x8xf32>
    %74 = vector.shape_cast %73 : vector<8x8xf32> to vector<1x8x8xf32>
    %75 = arith.truncf %74 : vector<1x8x8xf32> to vector<1x8x8xbf16>
    %76 = vector.extract_strided_slice %40 {offsets = [0, 72], sizes = [8, 8], strides = [1, 1]} : vector<8x128xf32> to vector<8x8xf32>
    %77 = vector.shape_cast %76 : vector<8x8xf32> to vector<1x8x8xf32>
    %78 = arith.truncf %77 : vector<1x8x8xf32> to vector<1x8x8xbf16>
    "tpu.trace_start"() <{level = 10 : i32, message = "bqd,bkd->bqk"}> : () -> ()
    %cst_25 = arith.constant dense<0.000000e+00> : vector<1x8x8xf32>
    %79 = tpu.matmul %72, %75, %cst_25 {dimension_numbers = #tpu.dot_dimension_numbers<[2], [2], [1], [1], [0, 0, 0, 1, 1, 1], [0], [0]>} : vector<1x8x8xbf16>, vector<1x8x8xbf16>, vector<1x8x8xf32> -> vector<1x8x8xf32>
    "tpu.trace_stop"() : () -> ()
    %cst_26 = arith.constant dense<0xFF800000> : vector<1x8xf32>
    %80 = vector.multi_reduction <maximumf>, %79, %cst_26 [2] : vector<1x8x8xf32> to vector<1x8xf32>
    %81 = vector.shape_cast %80 : vector<1x8xf32> to vector<1x8x1xf32>
    %82 = vector.broadcast %81 : vector<1x8x1xf32> to vector<1x8x8xf32>
    %83 = arith.subf %79, %82 : vector<1x8x8xf32>
    %84 = math.exp %83 : vector<1x8x8xf32>
    %cst_27 = arith.constant dense<0.000000e+00> : vector<1x8xf32>
    %85 = vector.multi_reduction <add>, %84, %cst_27 [2] : vector<1x8x8xf32> to vector<1x8xf32>
    %86 = vector.shape_cast %85 : vector<1x8xf32> to vector<1x8x1xf32>
    %87 = tpu.reciprocal %86 {approx = true} : vector<1x8x1xf32> -> vector<1x8x1xf32>
    %88 = vector.broadcast %87 : vector<1x8x1xf32> to vector<1x8x8xf32>
    %89 = arith.mulf %84, %88 : vector<1x8x8xf32>
    %90 = arith.truncf %89 : vector<1x8x8xf32> to vector<1x8x8xbf16>
    "tpu.trace_start"() <{level = 10 : i32, message = "bqk,bkd->bqd"}> : () -> ()
    %cst_28 = arith.constant dense<0.000000e+00> : vector<1x8x8xf32>
    %91 = tpu.matmul %90, %78, %cst_28 {dimension_numbers = #tpu.dot_dimension_numbers<[2], [1], [1], [2], [0, 0, 0, 1, 1, 2], [0], [0]>} : vector<1x8x8xbf16>, vector<1x8x8xbf16>, vector<1x8x8xf32> -> vector<1x8x8xf32>
    "tpu.trace_stop"() : () -> ()
    %c8 = arith.constant 8 : index
    %c0_29 = arith.constant 0 : index
    %92 = vector.load %arg6[%c8, %c0_29] : memref<32x128xf32, #tpu.memory_space<vmem>>, vector<8x128xf32>
    %93 = arith.truncf %92 : vector<8x128xf32> to vector<8x128xbf16>
    %94 = vector.shape_cast %91 : vector<1x8x8xf32> to vector<8x8xf32>
    %95 = arith.truncf %94 : vector<8x8xf32> to vector<8x8xbf16>
    %cst_30 = arith.constant dense<0.000000e+00> : vector<8x128xf32>
    %96 = tpu.matmul %95, %93, %cst_30 {dimension_numbers = #tpu.dot_dimension_numbers<[1], [0], [0], [1], [0, 0, 1, 1], [], []>} : vector<8x8xbf16>, vector<8x128xbf16>, vector<8x128xf32> -> vector<8x128xf32>
    %97 = arith.addf %69, %96 : vector<8x128xf32>
    %98 = vector.extract_strided_slice %40 {offsets = [0, 16], sizes = [8, 8], strides = [1, 1]} : vector<8x128xf32> to vector<8x8xf32>
    %99 = vector.shape_cast %98 : vector<8x8xf32> to vector<1x8x8xf32>
    %100 = arith.truncf %99 : vector<1x8x8xf32> to vector<1x8x8xbf16>
    %101 = vector.extract_strided_slice %40 {offsets = [0, 48], sizes = [8, 8], strides = [1, 1]} : vector<8x128xf32> to vector<8x8xf32>
    %102 = vector.shape_cast %101 : vector<8x8xf32> to vector<1x8x8xf32>
    %103 = arith.truncf %102 : vector<1x8x8xf32> to vector<1x8x8xbf16>
    %104 = vector.extract_strided_slice %40 {offsets = [0, 80], sizes = [8, 8], strides = [1, 1]} : vector<8x128xf32> to vector<8x8xf32>
    %105 = vector.shape_cast %104 : vector<8x8xf32> to vector<1x8x8xf32>
    %106 = arith.truncf %105 : vector<1x8x8xf32> to vector<1x8x8xbf16>
    "tpu.trace_start"() <{level = 10 : i32, message = "bqd,bkd->bqk"}> : () -> ()
    %cst_31 = arith.constant dense<0.000000e+00> : vector<1x8x8xf32>
    %107 = tpu.matmul %100, %103, %cst_31 {dimension_numbers = #tpu.dot_dimension_numbers<[2], [2], [1], [1], [0, 0, 0, 1, 1, 1], [0], [0]>} : vector<1x8x8xbf16>, vector<1x8x8xbf16>, vector<1x8x8xf32> -> vector<1x8x8xf32>
    "tpu.trace_stop"() : () -> ()
    %cst_32 = arith.constant dense<0xFF800000> : vector<1x8xf32>
    %108 = vector.multi_reduction <maximumf>, %107, %cst_32 [2] : vector<1x8x8xf32> to vector<1x8xf32>
    %109 = vector.shape_cast %108 : vector<1x8xf32> to vector<1x8x1xf32>
    %110 = vector.broadcast %109 : vector<1x8x1xf32> to vector<1x8x8xf32>
    %111 = arith.subf %107, %110 : vector<1x8x8xf32>
    %112 = math.exp %111 : vector<1x8x8xf32>
    %cst_33 = arith.constant dense<0.000000e+00> : vector<1x8xf32>
    %113 = vector.multi_reduction <add>, %112, %cst_33 [2] : vector<1x8x8xf32> to vector<1x8xf32>
    %114 = vector.shape_cast %113 : vector<1x8xf32> to vector<1x8x1xf32>
    %115 = tpu.reciprocal %114 {approx = true} : vector<1x8x1xf32> -> vector<1x8x1xf32>
    %116 = vector.broadcast %115 : vector<1x8x1xf32> to vector<1x8x8xf32>
    %117 = arith.mulf %112, %116 : vector<1x8x8xf32>
    %118 = arith.truncf %117 : vector<1x8x8xf32> to vector<1x8x8xbf16>
    "tpu.trace_start"() <{level = 10 : i32, message = "bqk,bkd->bqd"}> : () -> ()
    %cst_34 = arith.constant dense<0.000000e+00> : vector<1x8x8xf32>
    %119 = tpu.matmul %118, %106, %cst_34 {dimension_numbers = #tpu.dot_dimension_numbers<[2], [1], [1], [2], [0, 0, 0, 1, 1, 2], [0], [0]>} : vector<1x8x8xbf16>, vector<1x8x8xbf16>, vector<1x8x8xf32> -> vector<1x8x8xf32>
    "tpu.trace_stop"() : () -> ()
    %c16 = arith.constant 16 : index
    %c0_35 = arith.constant 0 : index
    %120 = vector.load %arg6[%c16, %c0_35] : memref<32x128xf32, #tpu.memory_space<vmem>>, vector<8x128xf32>
    %121 = arith.truncf %120 : vector<8x128xf32> to vector<8x128xbf16>
    %122 = vector.shape_cast %119 : vector<1x8x8xf32> to vector<8x8xf32>
    %123 = arith.truncf %122 : vector<8x8xf32> to vector<8x8xbf16>
    %cst_36 = arith.constant dense<0.000000e+00> : vector<8x128xf32>
    %124 = tpu.matmul %123, %121, %cst_36 {dimension_numbers = #tpu.dot_dimension_numbers<[1], [0], [0], [1], [0, 0, 1, 1], [], []>} : vector<8x8xbf16>, vector<8x128xbf16>, vector<8x128xf32> -> vector<8x128xf32>
    %125 = arith.addf %97, %124 : vector<8x128xf32>
    %126 = vector.extract_strided_slice %40 {offsets = [0, 24], sizes = [8, 8], strides = [1, 1]} : vector<8x128xf32> to vector<8x8xf32>
    %127 = vector.shape_cast %126 : vector<8x8xf32> to vector<1x8x8xf32>
    %128 = arith.truncf %127 : vector<1x8x8xf32> to vector<1x8x8xbf16>
    %129 = vector.extract_strided_slice %40 {offsets = [0, 56], sizes = [8, 8], strides = [1, 1]} : vector<8x128xf32> to vector<8x8xf32>
    %130 = vector.shape_cast %129 : vector<8x8xf32> to vector<1x8x8xf32>
    %131 = arith.truncf %130 : vector<1x8x8xf32> to vector<1x8x8xbf16>
    %132 = vector.extract_strided_slice %40 {offsets = [0, 88], sizes = [8, 8], strides = [1, 1]} : vector<8x128xf32> to vector<8x8xf32>
    %133 = vector.shape_cast %132 : vector<8x8xf32> to vector<1x8x8xf32>
    %134 = arith.truncf %133 : vector<1x8x8xf32> to vector<1x8x8xbf16>
    "tpu.trace_start"() <{level = 10 : i32, message = "bqd,bkd->bqk"}> : () -> ()
    %cst_37 = arith.constant dense<0.000000e+00> : vector<1x8x8xf32>
    %135 = tpu.matmul %128, %131, %cst_37 {dimension_numbers = #tpu.dot_dimension_numbers<[2], [2], [1], [1], [0, 0, 0, 1, 1, 1], [0], [0]>} : vector<1x8x8xbf16>, vector<1x8x8xbf16>, vector<1x8x8xf32> -> vector<1x8x8xf32>
    "tpu.trace_stop"() : () -> ()
    %cst_38 = arith.constant dense<0xFF800000> : vector<1x8xf32>
    %136 = vector.multi_reduction <maximumf>, %135, %cst_38 [2] : vector<1x8x8xf32> to vector<1x8xf32>
    %137 = vector.shape_cast %136 : vector<1x8xf32> to vector<1x8x1xf32>
    %138 = vector.broadcast %137 : vector<1x8x1xf32> to vector<1x8x8xf32>
    %139 = arith.subf %135, %138 : vector<1x8x8xf32>
    %140 = math.exp %139 : vector<1x8x8xf32>
    %cst_39 = arith.constant dense<0.000000e+00> : vector<1x8xf32>
    %141 = vector.multi_reduction <add>, %140, %cst_39 [2] : vector<1x8x8xf32> to vector<1x8xf32>
    %142 = vector.shape_cast %141 : vector<1x8xf32> to vector<1x8x1xf32>
    %143 = tpu.reciprocal %142 {approx = true} : vector<1x8x1xf32> -> vector<1x8x1xf32>
    %144 = vector.broadcast %143 : vector<1x8x1xf32> to vector<1x8x8xf32>
    %145 = arith.mulf %140, %144 : vector<1x8x8xf32>
    %146 = arith.truncf %145 : vector<1x8x8xf32> to vector<1x8x8xbf16>
    "tpu.trace_start"() <{level = 10 : i32, message = "bqk,bkd->bqd"}> : () -> ()
    %cst_40 = arith.constant dense<0.000000e+00> : vector<1x8x8xf32>
    %147 = tpu.matmul %146, %134, %cst_40 {dimension_numbers = #tpu.dot_dimension_numbers<[2], [1], [1], [2], [0, 0, 0, 1, 1, 2], [0], [0]>} : vector<1x8x8xbf16>, vector<1x8x8xbf16>, vector<1x8x8xf32> -> vector<1x8x8xf32>
    "tpu.trace_stop"() : () -> ()
    %c24 = arith.constant 24 : index
    %c0_41 = arith.constant 0 : index
    %148 = vector.load %arg6[%c24, %c0_41] : memref<32x128xf32, #tpu.memory_space<vmem>>, vector<8x128xf32>
    %149 = arith.truncf %148 : vector<8x128xf32> to vector<8x128xbf16>
    %150 = vector.shape_cast %147 : vector<1x8x8xf32> to vector<8x8xf32>
    %151 = arith.truncf %150 : vector<8x8xf32> to vector<8x8xbf16>
    %cst_42 = arith.constant dense<0.000000e+00> : vector<8x128xf32>
    %152 = tpu.matmul %151, %149, %cst_42 {dimension_numbers = #tpu.dot_dimension_numbers<[1], [0], [0], [1], [0, 0, 1, 1], [], []>} : vector<8x8xbf16>, vector<8x128xbf16>, vector<8x128xf32> -> vector<8x128xf32>
    %153 = arith.addf %125, %152 : vector<8x128xf32>
    %154 = arith.addf %1, %153 : vector<8x128xf32>
    %c0_43 = arith.constant 0 : index
    %c0_44 = arith.constant 0 : index
    %155 = vector.load %arg7[%c0_43, %c0_44] : memref<1x128xf32, #tpu.memory_space<vmem>>, vector<1x128xf32>
    %156 = vector.broadcast %155 : vector<1x128xf32> to vector<8x128xf32>
    %157 = arith.addf %154, %156 : vector<8x128xf32>
    %c0_45 = arith.constant 0 : index
    %c0_46 = arith.constant 0 : index
    %158 = vector.load %arg8[%c0_45, %c0_46] : memref<1x128xf32, #tpu.memory_space<vmem>>, vector<1x128xf32>
    %c0_47 = arith.constant 0 : index
    %c0_48 = arith.constant 0 : index
    %159 = vector.load %arg9[%c0_47, %c0_48] : memref<1x128xf32, #tpu.memory_space<vmem>>, vector<1x128xf32>
    %cst_49 = arith.constant 0.000000e+00 : f32
    %160 = vector.shape_cast %4 : vector<1x128xi1> to vector<1x128xi1>
    %161 = vector.broadcast %160 : vector<1x128xi1> to vector<8x128xi1>
    %162 = vector.broadcast %cst_49 : f32 to vector<8x128xf32>
    %163 = arith.select %161, %157, %162 : vector<8x128xi1>, vector<8x128xf32>
    %cst_50 = arith.constant dense<0.000000e+00> : vector<8xf32>
    %164 = vector.multi_reduction <add>, %163, %cst_50 [1] : vector<8x128xf32> to vector<8xf32>
    %165 = vector.shape_cast %164 : vector<8xf32> to vector<8x1xf32>
    %cst_51 = arith.constant 3.125000e-02 : f32
    %166 = vector.broadcast %cst_51 : f32 to vector<8x1xf32>
    %167 = arith.mulf %165, %166 : vector<8x1xf32>
    %168 = vector.broadcast %167 : vector<8x1xf32> to vector<8x128xf32>
    %169 = arith.subf %157, %168 : vector<8x128xf32>
    %cst_52 = arith.constant 0.000000e+00 : f32
    %170 = vector.shape_cast %4 : vector<1x128xi1> to vector<1x128xi1>
    %171 = vector.broadcast %170 : vector<1x128xi1> to vector<8x128xi1>
    %172 = vector.broadcast %cst_52 : f32 to vector<8x128xf32>
    %173 = arith.select %171, %169, %172 : vector<8x128xi1>, vector<8x128xf32>
    %174 = arith.mulf %173, %173 : vector<8x128xf32>
    %cst_53 = arith.constant dense<0.000000e+00> : vector<8xf32>
    %175 = vector.multi_reduction <add>, %174, %cst_53 [1] : vector<8x128xf32> to vector<8xf32>
    %176 = vector.shape_cast %175 : vector<8xf32> to vector<8x1xf32>
    %cst_54 = arith.constant 3.125000e-02 : f32
    %177 = vector.broadcast %cst_54 : f32 to vector<8x1xf32>
    %178 = arith.mulf %176, %177 : vector<8x1xf32>
    %cst_55 = arith.constant 9.99999974E-6 : f32
    %179 = vector.broadcast %cst_55 : f32 to vector<8x1xf32>
    %180 = arith.addf %178, %179 : vector<8x1xf32>
    %181 = math.rsqrt %180 : vector<8x1xf32>
    %182 = vector.broadcast %181 : vector<8x1xf32> to vector<8x128xf32>
    %183 = arith.mulf %173, %182 : vector<8x128xf32>
    %184 = vector.broadcast %158 : vector<1x128xf32> to vector<8x128xf32>
    %185 = arith.mulf %183, %184 : vector<8x128xf32>
    %186 = vector.broadcast %159 : vector<1x128xf32> to vector<8x128xf32>
    %187 = arith.addf %185, %186 : vector<8x128xf32>
    %188 = arith.truncf %187 : vector<8x128xf32> to vector<8x128xbf16>
    %c0_56 = arith.constant 0 : index
    %c0_57 = arith.constant 0 : index
    %189 = vector.load %arg10[%c0_56, %c0_57] : memref<128x128xbf16, #tpu.memory_space<vmem>>, vector<128x128xbf16>
    %cst_58 = arith.constant dense<0.000000e+00> : vector<8x128xf32>
    %190 = tpu.matmul %188, %189, %cst_58 {dimension_numbers = #tpu.dot_dimension_numbers<[1], [0], [0], [1], [0, 0, 1, 1], [], []>} : vector<8x128xbf16>, vector<128x128xbf16>, vector<8x128xf32> -> vector<8x128xf32>
    %c0_59 = arith.constant 0 : index
    %c0_60 = arith.constant 0 : index
    %191 = vector.load %arg11[%c0_59, %c0_60] : memref<1x128xf32, #tpu.memory_space<vmem>>, vector<1x128xf32>
    %192 = vector.broadcast %191 : vector<1x128xf32> to vector<8x128xf32>
    %193 = arith.addf %190, %192 : vector<8x128xf32>
    %cst_61 = arith.constant 0.000000e+00 : f32
    %194 = vector.broadcast %cst_61 : f32 to vector<8x128xf32>
    %195 = arith.maximumf %193, %194 : vector<8x128xf32>
    %196 = arith.truncf %195 : vector<8x128xf32> to vector<8x128xbf16>
    %c0_62 = arith.constant 0 : index
    %c0_63 = arith.constant 0 : index
    %197 = vector.load %arg12[%c0_62, %c0_63] : memref<128x128xbf16, #tpu.memory_space<vmem>>, vector<128x128xbf16>
    %cst_64 = arith.constant dense<0.000000e+00> : vector<8x128xf32>
    %198 = tpu.matmul %196, %197, %cst_64 {dimension_numbers = #tpu.dot_dimension_numbers<[1], [0], [0], [1], [0, 0, 1, 1], [], []>} : vector<8x128xbf16>, vector<128x128xbf16>, vector<8x128xf32> -> vector<8x128xf32>
    %c0_65 = arith.constant 0 : index
    %c0_66 = arith.constant 0 : index
    %199 = vector.load %arg13[%c0_65, %c0_66] : memref<1x128xf32, #tpu.memory_space<vmem>>, vector<1x128xf32>
    %200 = vector.broadcast %199 : vector<1x128xf32> to vector<8x128xf32>
    %201 = arith.addf %198, %200 : vector<8x128xf32>
    %202 = arith.addf %157, %201 : vector<8x128xf32>
    %203 = vector.shape_cast %202 : vector<8x128xf32> to vector<1x8x128xf32>
    %c0_67 = arith.constant 0 : index
    %c0_68 = arith.constant 0 : index
    %c0_69 = arith.constant 0 : index
    %204 = vector.load %arg14[%c0_67, %c0_68, %c0_69] : memref<1x8x128xf32, #tpu.memory_space<vmem>>, vector<1x8x128xf32>
    tpu.vector_store %arg14[%c0_67, %c0_68, %c0_69], %203 {strides = array<i32>} : memref<1x8x128xf32, #tpu.memory_space<vmem>>, vector<1x8x128xf32>,
    return
  }
  func.func @transform_0(%arg0: i32) -> (i32, i32, i32) {
    %c0_i32 = arith.constant 0 : i32
    %c0_i32_0 = arith.constant 0 : i32
    %c0_i32_1 = arith.constant 0 : i32
    return %arg0, %c0_i32, %c0_i32_0 : i32, i32, i32
  }
  func.func @transform_1(%arg0: i32) -> (i32, i32) {
    %c0_i32 = arith.constant 0 : i32
    %c0_i32_0 = arith.constant 0 : i32
    %c0_i32_1 = arith.constant 0 : i32
    return %c0_i32, %c0_i32_0 : i32, i32
  }
  func.func @transform_2(%arg0: i32) -> (i32, i32) {
    %c0_i32 = arith.constant 0 : i32
    %c0_i32_0 = arith.constant 0 : i32
    %c0_i32_1 = arith.constant 0 : i32
    return %c0_i32, %c0_i32_0 : i32, i32
  }
  func.func @transform_3(%arg0: i32) -> (i32, i32) {
    %c0_i32 = arith.constant 0 : i32
    %c0_i32_0 = arith.constant 0 : i32
    %c0_i32_1 = arith.constant 0 : i32
    return %c0_i32, %c0_i32_0 : i32, i32
  }
  func.func @transform_4(%arg0: i32) -> (i32, i32) {
    %c0_i32 = arith.constant 0 : i32
    %c0_i32_0 = arith.constant 0 : i32
    %c0_i32_1 = arith.constant 0 : i32
    return %c0_i32, %c0_i32_0 : i32, i32
  }
  func.func @transform_5(%arg0: i32) -> (i32, i32) {
    %c0_i32 = arith.constant 0 : i32
    %c0_i32_0 = arith.constant 0 : i32
    %c0_i32_1 = arith.constant 0 : i32
    return %c0_i32, %c0_i32_0 : i32, i32
  }
  func.func @transform_6(%arg0: i32) -> (i32, i32) {
    %c0_i32 = arith.constant 0 : i32
    %c0_i32_0 = arith.constant 0 : i32
    %c0_i32_1 = arith.constant 0 : i32
    return %c0_i32, %c0_i32_0 : i32, i32
  }
  func.func @transform_7(%arg0: i32) -> (i32, i32) {
    %c0_i32 = arith.constant 0 : i32
    %c0_i32_0 = arith.constant 0 : i32
    %c0_i32_1 = arith.constant 0 : i32
    return %c0_i32, %c0_i32_0 : i32, i32
  }
  func.func @transform_8(%arg0: i32) -> (i32, i32) {
    %c0_i32 = arith.constant 0 : i32
    %c0_i32_0 = arith.constant 0 : i32
    %c0_i32_1 = arith.constant 0 : i32
    return %c0_i32, %c0_i32_0 : i32, i32
  }
  func.func @transform_9(%arg0: i32) -> (i32, i32) {
    %c0_i32 = arith.constant 0 : i32
    %c0_i32_0 = arith.constant 0 : i32
    %c0_i32_1 = arith.constant 0 : i32
    return %c0_i32, %c0_i32_0 : i32, i32
  }
  func.func @transform_10(%arg0: i32) -> (i32, i32) {
    %c0_i32 = arith.constant 0 : i32
    %c0_i32_0 = arith.constant 0 : i32
    %c0_i32_1 = arith.constant 0 : i32
    return %c0_i32, %c0_i32_0 : i32, i32
  }
  func.func @transform_11(%arg0: i32) -> (i32, i32) {
    %c0_i32 = arith.constant 0 : i32
    %c0_i32_0 = arith.constant 0 : i32
    %c0_i32_1 = arith.constant 0 : i32
    return %c0_i32, %c0_i32_0 : i32, i32
  }
  func.func @transform_12(%arg0: i32) -> (i32, i32) {
    %c0_i32 = arith.constant 0 : i32
    %c0_i32_0 = arith.constant 0 : i32
    %c0_i32_1 = arith.constant 0 : i32
    return %c0_i32, %c0_i32_0 : i32, i32
  }
  func.func @transform_13(%arg0: i32) -> (i32, i32, i32) {
    %c0_i32 = arith.constant 0 : i32
    %c0_i32_0 = arith.constant 0 : i32
    %c0_i32_1 = arith.constant 0 : i32
    return %arg0, %c0_i32, %c0_i32_0 : i32, i32, i32
  }
}

</mosaic_0001>

<bundles_post_ra>
// kernel: tpu_custom_call.1
= control target key start
LH: loop header
LB: loop body
LE: loop exit
PB: predicated region body
PF: predicated region fallthrough
CT: control target
= control target key end

     0   :  { %s2222_s0 = inlined_call_operand.hbm [shape: f32[2,8,128], index: 0, kind: input, shape index: {}]   ;;  %s2223_s1 = inlined_call_operand.hbm [shape: f32[1,128], index: 1, kind: input, shape index: {}]   ;;  %s2224_s2 = inlined_call_operand.vmem [shape: f32[1,128], index: 2, kind: input, shape index: {}]   ;;  %s2225_s3 = inlined_call_operand.hbm [shape: bf16[128,128], index: 3, kind: input, shape index: {}]   ;;  %s2226_s4 = inlined_call_operand.vmem [shape: f32[1,128], index: 4, kind: input, shape index: {}]   ;;  %s2227_s5 = inlined_call_operand.hbm [shape: f32[32,128], index: 5, kind: input, shape index: {}]   ;;  %s2228_s6 = inlined_call_operand.vmem [shape: f32[1,128], index: 6, kind: input, shape index: {}]   ;;  %s2229_s7 = inlined_call_operand.vmem [shape: f32[1,128], index: 7, kind: input, shape index: {}]   ;;  %s2230_s8 = inlined_call_operand.vmem [shape: f32[1,128], index: 8, kind: input, shape index: {}]   ;;  %s2231_s9 = inlined_call_operand.hbm [shape: bf16[128,128], index: 9, kind: input, shape index: {}]   ;;  %s2232_s10 = inlined_call_operand.vmem [shape: f32[1,128], index: 10, kind: input, shape index: {}]   ;;  %s2233_s11 = inlined_call_operand.hbm [shape: bf16[128,128], index: 11, kind: input, shape index: {}]   ;;  %s2234_s12 = inlined_call_operand.vmem [shape: f32[1,128], index: 12, kind: input, shape index: {}]   ;;  %s2235_s13 = inlined_call_operand.hbm [shape: f32[2,8,128], index: 13, kind: output, shape index: {}]  }
   0x1   :  { %2237 = sst [smem:[#allocation19_spill]] %s2223_s1 }
   0x2   :  { %2238 = sst [smem:[#allocation20_spill]] %s2225_s3 }
   0x3   :  { %2239 = sst [smem:[#allocation21_spill]] %s2227_s5 }
   0x4   :  { %2240 = sst [smem:[#allocation22_spill]] %s2231_s9 }
   0x5   :  { %2241 = sst [smem:[#allocation23_spill]] %s2233_s11 }
   0x6   :  { %2242 = sst [smem:[#allocation24_spill]] %s2234_s12 }
   0x7   :  { %2243 = sst [smem:[#allocation25_spill]] %s2235_s13 }
   0x8   :  { %18 = vsyncpa [#allocation3], 0 }
   0x9   :  { %20 = vsyncpa [#allocation3 + $0x1], 0 }
   0xa   :  { %21 = vsyncpa [#allocation6], 0 }
   0xb   :  { %22 = vsyncpa [#allocation9], 0 }
   0xc   :  { %23 = vsyncpa [#allocation12], 0 }
   0xd   :  { %24 = vsyncpa [#allocation4], 0 }
   0xe   :  { %26 = vsyncpa [#allocation4 + $0x1], 0  ;;  %s1961_s25 = smov 0   ;;  %s1963_s26 = smov 0  }
   0xf   :  { %s1965_s27 = smov 0   ;;  %s1967_s28 = smov 0  }
  0x10 LB: > { %s2244_s1 = sld [smem:[#allocation19_spill]]  ;;  %s1985_s15 = sadd.s32 4294967295, %s1869_s28   ;;  %s1869_s28 = sphi %s1967_s28, %s2261_s28   ;;  %s1865_s27 = sphi %s1965_s27, %s2260_s27   ;;  %s1861_s26 = sphi %s1963_s26, %s2259_s26   ;;  %s1857_s25 = sphi %s1961_s25, %s2258_s25  }
  0x11   : > { %p1318_p0 = scmp.ge.s32.totalorder %s1869_s28, 1  ;;  %p53_p1 = scmp.eq.s32.totalorder %s1985_s15, 0 }
  0x12   : > { %p341_p2 = scmp.lt.s32.totalorder %s1869_s28, 3  ;;  %s1871_s17 = smov [#allocation5]  }
  0x13   : > { %s355_s18 = sshll.u32 %s1871_s17, 4  ;;  %s2246_s5 = sld [smem:[#allocation21_spill]]  ;;  %s356_s18 = int_to_ptr.vmem [resolvable:$true] %s355_s18 }
  0x14   : > { %p1990_p3 = pnand %p1318_p0, %p341_p2  ;;  %s1872_s23 = smov [#allocation8]  }
  0x15   : > { %s386_s24 = sshll.u32 %s1872_s23, 4  ;;  %s1873_s29 = smov 128   ;;  %s387_s24 = int_to_ptr.vmem [resolvable:$true] %s386_s24 }
  0x16   : > { %s353_s14 = sshll.u32 %s2244_s1, 4  ;;  %p1495_p5 = pneg %p1990_p3  ;;  %s354_s14 = int_to_ptr.hbm [resolvable:$true] %s353_s14 }
  0x17   : > { %s1874_s30 = smov 8   ;;  %s2248_s3 = sld [smem:[#allocation20_spill]] }
  0x18   : > { %p2002_p6 = pnand %p1495_p5, %p53_p1  ;;  %s1875_s1 = smov [#allocation7]  }
  0x19   : > { %s384_s21 = sshll.u32 %s2246_s5, 4  ;;  %s369_s5 = sshll.u32 %s1875_s1, 4  ;;  %s385_s21 = int_to_ptr.hbm [resolvable:$true] %s384_s21  ;;  %s370_s5 = int_to_ptr.vmem [resolvable:$true] %s369_s5 }
  0x1a   : > { %1498 = dma.hbm_to_vmem [thread:$0]  (!%p2002_p6), %s354_s14, 16, %s356_s18, [#allocation6]  }
  0x1b   : > { %1504 = dma.hbm_to_vmem [thread:$0]  (!%p2002_p6), %s385_s21, 512, %s387_s24, [#allocation9], %s1873_s29, %s1873_s29, %s1874_s30  }
  0x1c   : > { %s2249_s9 = sld [smem:[#allocation22_spill]]  ;;  %s1876_s14 = smov 64  }
  0x1d   : > { %s367_s20 = sshll.u32 %s2248_s3, 4  ;;  %s1877_s18 = smov 4   ;;  %s368_s20 = int_to_ptr.hbm [resolvable:$true] %s367_s20 }
  0x1e   : > { %1501 = dma.hbm_to_vmem [thread:$0]  (!%p2002_p6), %s368_s20, 1024, %s370_s5, [#allocation6], %s1876_s14, %s1876_s14, %s1877_s18  }
  0x1f   : > { %s1878_s21 = smov [#allocation10]   ;;  %s2250_s11 = sld [smem:[#allocation23_spill]] }
  0x20   : > { %s409_s1 = sshll.u32 %s1878_s21, 4  ;;  %s1879_s5 = smov [#allocation11]   ;;  %s410_s1 = int_to_ptr.vmem [resolvable:$true] %s409_s1 }
  0x21   : > { %s426_s13 = sshll.u32 %s1879_s5, 4  ;;  %s1317_s30 = sadd.s32 4294967294, %s1869_s28   ;;  %s427_s13 = int_to_ptr.vmem [resolvable:$true] %s426_s13 }
  0x22   : > { %s407_s23 = sshll.u32 %s2249_s9, 4  ;;  %s2027_s17 = sadd.s32 1, %s1869_s28   ;;  %s408_s23 = int_to_ptr.hbm [resolvable:$true] %s407_s23 }
  0x23   : > { %1507 = dma.hbm_to_vmem [thread:$0]  (!%p2002_p6), %s408_s23, 1024, %s410_s1, [#allocation9], %s1876_s14, %s1876_s14, %s1877_s18  }
  0x24   : > { %s39_s19 = sadd.s32 1, %s1865_s27  ;;  %s36_s20 = ssub.s32 %s1869_s28, %s2027_s17 }
  0x25   : > { %s424_s12 = sshll.u32 %s2250_s11, 4  ;;  %p46_p7 = scmp.ne.s32.totalorder %s1865_s27, %s1861_s26  ;;  %s425_s12 = int_to_ptr.hbm [resolvable:$true] %s424_s12 }
  0x26   : > { %1510 = dma.hbm_to_vmem [thread:$0]  (!%p2002_p6), %s425_s12, 1024, %s427_s13, [#allocation12], %s1876_s14, %s1876_s14, %s1877_s18  }
  0x27   : > { %p37_p8 = scmp.eq.s32.totalorder %s36_s20, 0  ;;  %p47_p9 = scmp.eq.s32.totalorder %s1869_s28, 0 }
  0x28   : > { %p52_p10 = scmp.ne.s32.totalorder %s1861_s26, %s1857_s25  ;;  %p328_p11 = scmp.eq.s32.totalorder %s1985_s15, 1 }
  0x29   : > { %s2039_s23 = scalar_select %p37_p8, %s1865_s27, %s39_s19  }
  0x2a   : > { %p2043_p12 = por %p53_p1, %p52_p10  ;;  %p2047_p13 = por %p328_p11, %p46_p7 }
  0x2b   : > { %p334_p0 = scmp.eq.s32.totalorder %s1317_s30, 1  ;;  %p48_p2 = por %p47_p9, %p46_p7 }
  0x2c   : > { %s443_s18 = sand.u32 1, %s1865_s27   ;;  %p1524_p6 = scmp.lt.s32.totalorder %s1869_s28, 2 }
  0x2d   : > { %p2052_p5 = por %p334_p0, %p52_p10  ;;  %s1325_s1 = sshll.u32 %s443_s18, 3 }
  0x2e   : > { %s1326_s24 = sshll.u32 %s1869_s28, 3  ;;  %s447_s19 = scalar_lea.vmem [#allocation2], %s1325_s1 }
  0x2f   : > { %s451_s5 = scalar_lea.hbm %s2222_s0, %s1326_s24  ;;  %s455_s20 = sshll.u32 %s447_s19, 4  ;;  %s456_s20 = int_to_ptr.vmem [resolvable:$true] %s455_s20 }
  0x30   : > { %s453_s13 = sshll.u32 %s451_s5, 4  ;;  %p2061_p8 = pnand %p1524_p6, %p48_p2  ;;  %s454_s13 = int_to_ptr.hbm [resolvable:$true] %s453_s13 }
  0x31   : > { %s444_s3 = scalar_lea.sflag [#allocation3], %s443_s18  ;;  %s1761_s9 = sshra.s32 %s454_s13, 4  ;;  %s1762_s9 = int_to_ptr.hbm [resolvable:$true] %s1761_s9 }
  0x32   : > { %s1763_s11 = scalar_lea.hbm %s1762_s9, 8  ;;  %p1765_p9 = pneg %p2061_p8 }
  0x33   : > { %p1764_p7 = scmp.ne.s32.totalorder %s1762_s9, %s1763_s11  ;;  %s1768_s1 = scalar_lea.hbm %s2222_s0, 16 }
  0x34   : > { %p1769_p0 = scmp.lt.s32.totalorder %s1762_s9, %s2222_s0  ;;  %p1770_p2 = scmp.lt.s32.totalorder %s1768_s1, %s1763_s11 }
  0x35   : > { %p1766_p10 = pnand %p1765_p9, %p1764_p7 }
  0x36   : > { %p1771_p6 = por %p1770_p2, %p1769_p0 }
  0x37   : > { %p1767_p11 = pneg %p1766_p10 }
  0x39   : > { %p1772_p4 = pnand %p1771_p6, %p1767_p11 }
  0x3b   : > { %1775 = shalt.err (!%p1772_p4)
}
  0x3c   : > { %1514 = dma.hbm_to_vmem [thread:$0]  (!%p2061_p8), %s454_s13, 128, %s456_s20, %s444_s3  }
  0x3d   : > { %464 = sbr.rel (%p1990_p3) target bundleno = 2243 (0x8c3), region = 72  ;;  %s2078_s18 = sand.u32 (!%p1990_p3), 1, %s1861_s26  }
  0x3e   : > { %s1328_s19 = sshll.u32 (!%p1990_p3), %s2078_s18, 3  ;;  %s467_s24 = scalar_lea.sflag (!%p1990_p3), [#allocation3], %s2078_s18 }
  0x3f   : > { %s470_s9 = scalar_lea.vmem (!%p1990_p3), [#allocation2], %s1328_s19 }
  0x42   : > { %1836 = dma.done.wait (%p2043_p12), %s467_s24, 128  }
  0x43   : > { %1838 = vsyncadd (%p2043_p12), %s467_s24, 4294967168 }
  0x44   : > { %1840 = dma.done.wait (%p53_p1), [#allocation6], 1040  }
  0x45   : > { %1842 = vsyncadd (%p53_p1), [#allocation6], 4294966256 }
  0x46   : > { %1844 = dma.done.wait (%p53_p1), [#allocation9], 1536  }
  0x47   : > { %1846 = vsyncadd (%p53_p1), [#allocation9], 4294965760 }
  0x48   : > { %1848 = dma.done.wait (%p53_p1), [#allocation12], 1024  }
  0x49   : > { %1850 = vsyncadd (%p53_p1), [#allocation12], 4294966272  ;;  %v541_v0 = vlaneseq  ;;  %v2103_v2 = vld [vmem:[%s470_s9] sm:$0xff]  ;;  %v1451_v12 = vld [vmem:[#allocation7 + $0x20] sm:$0xff]  ;;  %s1880_s13 = smov 120   ;;  %s1881_s20 = smov 96  }
  0x4a   : > { %v1454_v4 = vld [vmem:[#allocation7 + $0x38] sm:$0xff]  ;;  %v1453_v10 = vld [vmem:[#allocation7 + $0x30] sm:$0xff]  ;;  %v1452_v11 = vld [vmem:[#allocation7 + $0x28] sm:$0xff]  ;;  %s1882_s30 = smov 88   ;;  %vm666_vm4 = vcmask 64512   ;;  %s1883_s29 = smov 56  }
  0x4b   : > { %v2100_v1 = vand.u32 127, %v541_v0  ;;  %647 = vmatpush.bf16.msra.mxu0 %v1454_v4  ;;  %v1450_v13 = vld [vmem:[#allocation7 + $0x18] sm:$0xff]  ;;  %v1449_v14 = vld [vmem:[#allocation7 + $0x10] sm:$0xff]  ;;  %v1448_v15 = vld [vmem:[#allocation7 + $0x8] sm:$0xff]  ;;  %s1884_s1 = smov 112   ;;  %s1885_s12 = smov 64  }
  0x4c   : > { %v1447_v16 = vld [vmem:[#allocation7] sm:$0xff]  ;;  %v1583_v26 = vld [vmem:[#allocation5] ss:$0 sm:$0xff]  ;;  %v1584_v29 = vld [vmem:[%s2224_s2] ss:$0 sm:$0xff]  ;;  %s1886_s5 = smov 72  }
  0x4d   : > { %vm543_vm0 = vcmp.lt.s32.totalorder %v2100_v1, 32  ;;  %v1585_v33 = vld [vmem:[%s2226_s4] ss:$0 sm:$0xff]  ;;  %vm703_vm5 = vcmask 1043456   ;;  %s1887_s24 = smov 80   ;;  %s1888_s9 = smov 104  }
  0x4e   : > { %v548_v3 = vsel %vm543_vm0, %v2103_v2, 0.0  ;;  %s1889_s3 = smov 48   ;;  %s1890_s11 = smov 40  }
  0x4f   : > { %549 = vadd.xlane.f32.xlu0 %v548_v3  ;;  %648 = vmatpush.bf16.msra.mxu0 %v1453_v10  ;;  %s2256_s22 = sld [smem:[#allocation25_spill]] }
  0x53   : > { %649 = vmatpush.bf16.msra.mxu0 %v1452_v11 }
  0x57   : > { %650 = vmatpush.bf16.msra.mxu0 %v1451_v12 }
  0x5b   : > { %651 = vmatpush.bf16.msra.mxu0 %v1450_v13 }
  0x5f   : > { %652 = vmatpush.bf16.msra.mxu0 %v1449_v14 }
  0x63   : > { %653 = vmatpush.bf16.msra.mxu0 %v1448_v15 }
  0x67   : > { %654 = vmatpush.bf16.msra.mxu0 %v1447_v16 }
  0xc2   : > { %v550_v5 = vpop.xlane.xlu0 %549 }
  0xc3   : > { %v551_v6 = vmul.f32 0.03125, %v550_v5 }
  0xc5   : > { %v552_v7 = vsub.f32 %v2103_v2, %v551_v6 }
  0xc7   : > { %v553_v8 = vsel %vm543_vm0, %v552_v7, 0.0 }
  0xc8   : > { %v554_v9 = vmul.f32 %v553_v8, %v553_v8 }
  0xca   : > { %555 = vadd.xlane.f32.xlu0 %v554_v9 }
 0x13d   : > { %v556_v17 = vpop.xlane.xlu0 %555 }
 0x13e   : > { %v557_v18 = vmul.f32 0.03125, %v556_v17  ;;  %v720_v17 = vld [vmem:[#allocation8] sm:$0xff] }
 0x140   : > { %v558_v19 = vadd.f32 1e-05, %v557_v18  ;;  %v721_v18 = vpack.c.bf16 %v720_v17, %v720_v17  ;;  %v1586_v17 = vld [vmem:[%s2228_s6] ss:$0 sm:$0xff] }
 0x142   : > { %1591 = vrsqrt.f32 %v558_v19  ;;  %vm565_vm2 = vweird.f32 %v558_v19 }
 0x148   : > { %v1592_v20 = vpop.eup %1591 }
 0x149   : > { %v560_v21 = vmul.f32 %v1592_v20, %v558_v19  ;;  %vm566_vm1 = vweird.f32 %v1592_v20  ;;  %v805_v19 = vsel %vm703_vm5, %v721_v18, 0 }
 0x14a   : > { %vm567_vm3 = vmor %vm565_vm2, %vm566_vm1 }
 0x14b   : > { %v561_v22 = vmul.f32 %v1592_v20, %v560_v21 }
 0x14d   : > { %v562_v23 = vmul.f32 0.5, %v561_v22 }
 0x14f   : > { %v563_v24 = vsub.f32 1.5, %v562_v23 }
 0x151   : > { %v564_v25 = vmul.f32 %v1592_v20, %v563_v24 }
 0x153   : > { %v568_v27 = vsel %vm567_vm3, %v1592_v20, %v564_v25  ;;  %v779_v20 = vld [vmem:[#allocation8 + $0x8] sm:$0xff] }
 0x154   : > { %v569_v28 = vmul.f32 %v568_v27, %v553_v8  ;;  %v780_v21 = vpack.c.bf16 %v779_v20, %v779_v20 }
 0x156   : > { %v573_v30 = vmul.f32 %v1583_v26, %v569_v28  ;;  %v786_v22 = vsel %vm703_vm5, %v780_v21, 0 }
 0x158   : > { %v577_v31 = vadd.f32 %v1584_v29, %v573_v30 }
 0x15a   : > { %v578_v32 = vpack.c.bf16 %v577_v31, %v577_v31 }
 0x15c   : > { %655 = vmatmul.bf16.vlgmr.msra.gmra.mxu0 %v578_v32 }
 0x1d9   : > { %v656_v34 = vpop.f32.mrf.mxu0 }
 0x1da   : > { %v657_v35 = vadd.f32 %v1585_v33, %v656_v34 }
 0x1dc   : > { %v660_v36 = vpack.c.bf16 %v657_v35, %v657_v35 }
 0x1de   : > { %v662_v37 = vunpack.c.l.b16 %v660_v36 }
 0x1e0   : > { %v2117_v38 = vpack.c.b16 %v662_v37, %v662_v37 }
 0x1e1   : > { %v658_v39 = vpop.f32.mrf.mxu0 }
 0x1e2   : > { %723 = vrot.lane.b32.xlu2 %v2117_v38, %s1880_s13  ;;  %664 = vrot.lane.b32.xlu1 %v2117_v38, %s1881_s20  ;;  %s538_s20 = scalar_lea.vmem [#allocation13], %s1328_s19  ;;  %s1811_s19 = scalar_lea.hbm %s2256_s22, 16 }
 0x1ea   : > { %725 = vrot.lane.b32.xlu1 %v2117_v38, %s1882_s30  ;;  %s1196_s30 = sshll.u32 %s538_s20, 4  ;;  %s1197_s30 = int_to_ptr.vmem [resolvable:$true] %s1196_s30 }
 0x23c   : > { %v724_v44 = vpop.permute.xlu2 %723 }
 0x254   : > { %v665_v40 = vpop.permute.xlu1 %664 }
 0x255   : > { %v671_v41 = vsel %vm666_vm4, %v665_v40, 0 }
 0x256   : > { %680 = vmatpush.bf16.xpose.msra.mxu1 %v671_v41 }
 0x25c   : > { %v726_v42 = vpop.permute.xlu1 %725 }
 0x25d   : > { %1367 = vmatmul.msk.bf16.vlgmr.msra.gmra.mxu1 %vm666_vm4, %v660_v36  ;;  %v731_v43 = vsel %vm666_vm4, %v726_v42, 0 }
 0x25e   : > { %740 = vmatpush.bf16.xpose.msra.mxu3 %v731_v43  ;;  %795 = vmatpush.bf16.msrb.mxu1 %v786_v22  ;;  %v1462_v22 = vld [vmem:[#allocation10 + $0x38] sm:$0xff] }
 0x265   : > { %1369 = vmatmul.msk.bf16.vlgmr.msra.gmra.mxu3 %vm666_vm4, %v724_v44 }
 0x266   : > { %814 = vmatpush.bf16.msrb.mxu3 %v805_v19 }
 0x2da   : > { %v682_v45 = vpop.f32.mrf.mxu1 }
 0x2db   : > { %v686_v46 = vsel %vm666_vm4, %v682_v45, -inf }
 0x2dc   : > { %687 = vmax.xlane.f32.xlu2 %v686_v46 }
 0x2e2   : > { %v684_v47 = vpop.f32.mrf.mxu1 }
 0x2e8   : > { %v742_v48 = vpop.f32.mrf.mxu3 }
 0x2e9   : > { %v746_v49 = vsel %vm666_vm4, %v742_v48, -inf }
 0x2ea   : > { %747 = vmax.xlane.f32.xlu0 %v746_v49 }
 0x2f0   : > { %v744_v50 = vpop.f32.mrf.mxu3 }
 0x2f4   : > { %758 = vrot.lane.b32.xlu2 %v2117_v38, %s1883_s29 }
 0x2fc   : > { %820 = vrot.lane.b32.xlu2 %v2117_v38, %s1884_s1 }
 0x2fe   : > { %698 = vrot.lane.b32.xlu0 %v2117_v38, %s1885_s12 }
 0x304   : > { %901 = vrot.lane.b32.xlu2 %v2117_v38, %s1886_s5  ;;  %s1444_s5 = sshll.u32 %s1985_s15, 3  ;;  %s1184_s15 = scalar_lea.sflag [#allocation4], %s2078_s18 }
 0x305   : > { %s1194_s13 = scalar_lea.hbm %s2256_s22, %s1444_s5 }
 0x306   : > { %s1198_s29 = sshll.u32 %s1194_s13, 4  ;;  %s1199_s29 = int_to_ptr.hbm [resolvable:$true] %s1198_s29 }
 0x307   : > { %s1805_s1 = sshra.s32 %s1199_s29, 4  ;;  %s1806_s1 = int_to_ptr.hbm [resolvable:$true] %s1805_s1 }
 0x308   : > { %s1807_s12 = scalar_lea.hbm %s1806_s1, 8  ;;  %p1812_p12 = scmp.lt.s32.totalorder %s1806_s1, %s2256_s22 }
 0x309   : > { %p1808_p1 = scmp.ne.s32.totalorder %s1806_s1, %s1807_s12  ;;  %p1813_p8 = scmp.lt.s32.totalorder %s1811_s19, %s1807_s12 }
 0x30b   : > { %p1809_p3 = pnand %p1808_p1, %p2047_p13  ;;  %p1814_p7 = por %p1813_p8, %p1812_p12 }
 0x30d   : > { %p1810_p4 = pneg %p1809_p3 }
 0x30f   : > { %p1815_p9 = pnand %p1814_p7, %p1810_p4 }
 0x34f   : > { %v688_v51 = vpop.xlane.xlu2 %687 }
 0x350   : > { %v689_v52 = vsub.f32 %v682_v45, %v688_v51 }
 0x352   : > { %v690_v53 = vmul.f32 1.442695, %v689_v52 }
 0x354   : > { %1593 = vpow2.f32 %v690_v53 }
 0x357   : > { %v759_v61 = vpop.permute.xlu2 %758 }
 0x358   : > { %v764_v0 = vsel %vm703_vm5, %v759_v61, 0 }
 0x35a   : > { %v1594_v54 = vpop.eup %1593 }
 0x35b   : > { %v692_v55 = vsel %vm666_vm4, %v1594_v54, 0.0 }
 0x35c   : > { %693 = vadd.xlane.f32.xlu1 %v692_v55 }
 0x35d   : > { %v748_v56 = vpop.xlane.xlu0 %747 }
 0x35e   : > { %v749_v57 = vsub.f32 %v742_v48, %v748_v56 }
 0x35f   : > { %v821_v8 = vpop.permute.xlu2 %820 }
 0x360   : > { %v750_v58 = vmul.f32 1.442695, %v749_v57 }
 0x362   : > { %1595 = vpow2.f32 %v750_v58 }
 0x367   : > { %v902_v12 = vpop.permute.xlu2 %901 }
 0x368   : > { %v1596_v59 = vpop.eup %1595  ;;  %v907_v15 = vsel %vm666_vm4, %v902_v12, 0 }
 0x369   : > { %v752_v60 = vsel %vm666_vm4, %v1596_v59, 0.0 }
 0x36a   : > { %753 = vadd.xlane.f32.xlu0 %v752_v60 }
 0x370   : > { %v699_v62 = vpop.permute.xlu0 %698 }
 0x371   : > { %v705_v63 = vsel %vm703_vm5, %v699_v62, 0 }
 0x372   : > { %714 = vmatpush.bf16.msra.mxu2 %v705_v63  ;;  %v876_v63 = vld [vmem:[#allocation8 + $0x10] sm:$0xff] }
 0x375   : > { %822 = vrot.lane.b32.xlu1 %v2117_v38, %s1887_s24 }
 0x376   : > { %773 = vmatpush.bf16.msrb.mxu2 %v764_v0 }
 0x37d   : > { %899 = vrot.lane.b32.xlu1 %v2117_v38, %s1888_s9 }
 0x3cf   : > { %v694_v3 = vpop.xlane.xlu1 %693 }
 0x3d0   : > { %1597 = vrcp.f32 %v694_v3  ;;  %v955_v3 = vld [vmem:[#allocation8 + $0x18] sm:$0xff] }
 0x3d6   : > { %v1598_v4 = vpop.eup %1597 }
 0x3d7   : > { %v696_v5 = vmul.f32 %v1598_v4, %v1594_v54 }
 0x3d9   : > { %v697_v6 = vpack.c.bf16 %v696_v5, %v696_v5  ;;  %v956_v5 = vpack.c.bf16 %v955_v3, %v955_v3 }
 0x3db   : > { %1368 = vmatmul.msk.bf16.vlgmr.msra.gmra.mxu2 %vm666_vm4, %v697_v6 }
 0x3dd   : > { %v754_v7 = vpop.xlane.xlu0 %753 }
 0x3de   : > { %1599 = vrcp.f32 %v754_v7  ;;  %v962_v7 = vsel %vm703_vm5, %v956_v5, 0 }
 0x3e4   : > { %v1600_v9 = vpop.eup %1599 }
 0x3e5   : > { %v756_v10 = vmul.f32 %v1600_v9, %v1596_v59 }
 0x3e7   : > { %v823_v11 = vpop.permute.xlu1 %822  ;;  %v757_v14 = vpack.c.bf16 %v756_v10, %v756_v10 }
 0x3e8   : > { %v828_v13 = vsel %vm666_vm4, %v823_v11, 0 }
 0x3e9   : > { %837 = vmatpush.bf16.xpose.msra.mxu2 %v828_v13 }
 0x3eb   : > { %1370 = vmatmul.msk.bf16.vlgmr.msrb.gmra.mxu2 %vm666_vm4, %v757_v14 }
 0x3ef   : > { %v900_v16 = vpop.permute.xlu1 %899 }
 0x3f1   : > { %916 = vmatpush.bf16.xpose.msrb.mxu2 %v907_v15 }
 0x3fb   : > { %1373 = vmatmul.msk.bf16.vlgmr.msra.gmra.mxu2 %vm666_vm4, %v821_v8 }
 0x40b   : > { %1376 = vmatmul.msk.bf16.vlgmr.msrb.gmra.mxu2 %vm666_vm4, %v900_v16 }
 0x45e   : > { %v716_v23 = vpop.f32.mrf.mxu2 }
 0x45f   : > { %v722_v24 = vpack.c.bf16 %v716_v23, %v716_v23 }
 0x461   : > { %1372 = vmatmul.msk.bf16.vlgmr.msrb.gmra.mxu3 %vm666_vm4, %v722_v24 }
 0x466   : > { %v718_v25 = vpop.f32.mrf.mxu2 }
 0x46e   : > { %v775_v26 = vpop.f32.mrf.mxu2 }
 0x46f   : > { %v781_v27 = vpack.c.bf16 %v775_v26, %v775_v26 }
 0x471   : > { %1371 = vmatmul.msk.bf16.vlgmr.msrb.gmra.mxu1 %vm666_vm4, %v781_v27 }
 0x476   : > { %v777_v28 = vpop.f32.mrf.mxu2 }
 0x477   : > { %v1460_v28 = vld [vmem:[#allocation10 + $0x28] sm:$0xff] }
 0x47e   : > { %v839_v29 = vpop.f32.mrf.mxu2 }
 0x47f   : > { %v843_v30 = vsel %vm666_vm4, %v839_v29, -inf }
 0x480   : > { %844 = vmax.xlane.f32.xlu0 %v843_v30  ;;  %v1458_v30 = vld [vmem:[#allocation10 + $0x18] sm:$0xff] }
 0x486   : > { %v841_v31 = vpop.f32.mrf.mxu2 }
 0x487   : > { %v1457_v31 = vld [vmem:[#allocation10 + $0x10] sm:$0xff] }
 0x48e   : > { %v918_v32 = vpop.f32.mrf.mxu2 }
 0x48f   : > { %v922_v33 = vsel %vm666_vm4, %v918_v32, -inf }
 0x490   : > { %923 = vmax.xlane.f32.xlu2 %v922_v33  ;;  %v1455_v33 = vld [vmem:[#allocation10] sm:$0xff] }
 0x494   : > { %855 = vrot.lane.b32.xlu0 %v2117_v38, %s1889_s3  ;;  %s2255_s3 = sld [smem:[#allocation24_spill]] }
 0x496   : > { %v920_v34 = vpop.f32.mrf.mxu2 }
 0x497   : > { %v1470_v34 = vld [vmem:[#allocation11 + $0x38] sm:$0xff] }
 0x498   : > { %1168 = vmatpush.bf16.msrb.mxu0 %v1470_v34 }
 0x4e4   : > { %v816_v35 = vpop.f32.mrf.mxu3 }
 0x4ec   : > { %v818_v36 = vpop.f32.mrf.mxu3 }
 0x4ed   : > { %v1469_v36 = vld [vmem:[#allocation11 + $0x30] sm:$0xff] }
 0x4ee   : > { %v797_v37 = vpop.f32.mrf.mxu1  ;;  %1169 = vmatpush.bf16.msrb.mxu0 %v1469_v36 }
 0x4ef   : > { %v817_v39 = vadd.f32 %v816_v35, %v797_v37 }
 0x4f3   : > { %v845_v40 = vpop.xlane.xlu0 %844 }
 0x4f4   : > { %v846_v41 = vsub.f32 %v839_v29, %v845_v40  ;;  %v1459_v29 = vld [vmem:[#allocation10 + $0x20] sm:$0xff] }
 0x4f5   : > { %v1467_v40 = vld [vmem:[#allocation11 + $0x20] sm:$0xff] }
 0x4f6   : > { %v847_v42 = vmul.f32 1.442695, %v846_v41  ;;  %v799_v43 = vpop.f32.mrf.mxu1 }
 0x4f7   : > { %v1466_v43 = vld [vmem:[#allocation11 + $0x18] sm:$0xff] }
 0x4f8   : > { %1601 = vpow2.f32 %v847_v42 }
 0x4fe   : > { %v1602_v44 = vpop.eup %1601 }
 0x4ff   : > { %v849_v45 = vsel %vm666_vm4, %v1602_v44, 0.0 }
 0x500   : > { %850 = vadd.xlane.f32.xlu1 %v849_v45 }
 0x503   : > { %v924_v46 = vpop.xlane.xlu2 %923 }
 0x504   : > { %v925_v47 = vsub.f32 %v918_v32, %v924_v46  ;;  %v1456_v32 = vld [vmem:[#allocation10 + $0x8] sm:$0xff]  ;;  %v1465_v46 = vld [vmem:[#allocation11 + $0x10] sm:$0xff] }
 0x506   : > { %v926_v48 = vmul.f32 1.442695, %v925_v47  ;;  %v856_v49 = vpop.permute.xlu0 %855 }
 0x507   : > { %v861_v50 = vsel %vm703_vm5, %v856_v49, 0  ;;  %v1587_v49 = vld [vmem:[%s2229_s7] ss:$0 sm:$0xff] }
 0x508   : > { %1603 = vpow2.f32 %v926_v48  ;;  %870 = vmatpush.bf16.msra.mxu1 %v861_v50 }
 0x50c   : > { %971 = vmatpush.bf16.msrb.mxu1 %v962_v7 }
 0x50e   : > { %v1604_v51 = vpop.eup %1603 }
 0x50f   : > { %v928_v52 = vsel %vm666_vm4, %v1604_v51, 0.0 }
 0x510   : > { %929 = vadd.xlane.f32.xlu0 %v928_v52  ;;  %v1588_v52 = vld [vmem:[%s2230_s8] ss:$0 sm:$0xff] }
 0x524   : > { %934 = vrot.lane.b32.xlu0 %v2117_v38, %s1890_s11  ;;  %v877_v38 = vpack.c.bf16 %v876_v63, %v876_v63 }
 0x526   : > { %v883_v0 = vsel %vm703_vm5, %v877_v38, 0  ;;  %v1590_v38 = vld [vmem:[%s2255_s3] ss:$0 sm:$0xff] }
 0x527   : > { %892 = vmatpush.bf16.msra.mxu3 %v883_v0 }
 0x52b   : > { %1085 = vmatpush.bf16.msrb.mxu3 %v1462_v22 }
 0x573   : > { %v851_v53 = vpop.xlane.xlu1 %850 }
 0x574   : > { %1605 = vrcp.f32 %v851_v53 }
 0x57a   : > { %v1606_v54 = vpop.eup %1605 }
 0x57b   : > { %v853_v55 = vmul.f32 %v1606_v54, %v1602_v44 }
 0x57d   : > { %v854_v56 = vpack.c.bf16 %v853_v55, %v853_v55 }
 0x57f   : > { %1374 = vmatmul.msk.bf16.vlgmr.msra.gmra.mxu1 %vm666_vm4, %v854_v56  ;;  %v1464_v56 = vld [vmem:[#allocation11 + $0x8] sm:$0xff] }
 0x583   : > { %v930_v57 = vpop.xlane.xlu0 %929 }
 0x584   : > { %1607 = vrcp.f32 %v930_v57  ;;  %v1463_v57 = vld [vmem:[#allocation11] sm:$0xff] }
 0x58a   : > { %v1608_v58 = vpop.eup %1607 }
 0x58b   : > { %v932_v59 = vmul.f32 %v1608_v58, %v1604_v51  ;;  %v1589_v58 = vld [vmem:[%s2232_s10] ss:$0 sm:$0xff] }
 0x58d   : > { %v933_v62 = vpack.c.bf16 %v932_v59, %v932_v59 }
 0x596   : > { %v935_v60 = vpop.permute.xlu0 %934 }
 0x597   : > { %v940_v61 = vsel %vm703_vm5, %v935_v60, 0 }
 0x598   : > { %949 = vmatpush.bf16.msra.mxu2 %v940_v61 }
 0x59b   : > { %1377 = vmatmul.msk.bf16.vlgmr.msra.gmra.mxu2 %vm666_vm4, %v933_v62 }
 0x5fc   : > { %v872_v4 = vpop.f32.mrf.mxu1 }
 0x5fd   : > { %v878_v6 = vpack.c.bf16 %v872_v4, %v872_v4 }
 0x5ff   : > { %1375 = vmatmul.msk.bf16.vlgmr.msra.gmra.mxu3 %vm666_vm4, %v878_v6 }
 0x604   : > { %v874_v8 = vpop.f32.mrf.mxu1 }
 0x61e   : > { %v951_v9 = vpop.f32.mrf.mxu2 }
 0x61f   : > { %v957_v10 = vpack.c.bf16 %v951_v9, %v951_v9 }
 0x621   : > { %1378 = vmatmul.msk.bf16.vlgmr.msrb.gmra.mxu1 %vm666_vm4, %v957_v10 }
 0x626   : > { %v953_v11 = vpop.f32.mrf.mxu2 }
 0x682   : > { %v894_v12 = vpop.f32.mrf.mxu3 }
 0x683   : > { %v898_v14 = vadd.f32 %v894_v12, %v817_v39  ;;  %v1468_v39 = vld [vmem:[#allocation11 + $0x28] sm:$0xff] }
 0x684   : > { %1170 = vmatpush.bf16.msrb.mxu0 %v1468_v39 }
 0x688   : > { %1171 = vmatpush.bf16.msrb.mxu0 %v1467_v40 }
 0x68a   : > { %v896_v13 = vpop.f32.mrf.mxu3 }
 0x68c   : > { %1172 = vmatpush.bf16.msrb.mxu0 %v1466_v43 }
 0x690   : > { %1173 = vmatpush.bf16.msrb.mxu0 %v1465_v46 }
 0x694   : > { %1174 = vmatpush.bf16.msrb.mxu0 %v1464_v56 }
 0x698   : > { %1175 = vmatpush.bf16.msrb.mxu0 %v1463_v57 }
 0x69e   : > { %v973_v15 = vpop.f32.mrf.mxu1 }
 0x69f   : > { %v977_v16 = vadd.f32 %v973_v15, %v898_v14 }
 0x6a1   : > { %v978_v18 = vadd.f32 %v977_v16, %v2103_v2  ;;  %v1461_v2 = vld [vmem:[#allocation10 + $0x30] sm:$0xff] }
 0x6a2   : > { %1086 = vmatpush.bf16.msrb.mxu3 %v1461_v2 }
 0x6a3   : > { %v2166_v19 = vadd.f32 %v1586_v17, %v978_v18 }
 0x6a5   : > { %v986_v20 = vsel %vm543_vm0, %v2166_v19, 0.0 }
 0x6a6   : > { %987 = vadd.xlane.f32.xlu0 %v986_v20  ;;  %v975_v21 = vpop.f32.mrf.mxu1  ;;  %1087 = vmatpush.bf16.msrb.mxu3 %v1460_v28 }
 0x6aa   : > { %1088 = vmatpush.bf16.msrb.mxu3 %v1459_v29 }
 0x6ae   : > { %1089 = vmatpush.bf16.msrb.mxu3 %v1458_v30 }
 0x6b2   : > { %1090 = vmatpush.bf16.msrb.mxu3 %v1457_v31 }
 0x6b6   : > { %1091 = vmatpush.bf16.msrb.mxu3 %v1456_v32 }
 0x6ba   : > { %1092 = vmatpush.bf16.msrb.mxu3 %v1455_v33 }
 0x719   : > { %v988_v23 = vpop.xlane.xlu0 %987 }
 0x71a   : > { %v989_v24 = vmul.f32 0.03125, %v988_v23 }
 0x71c   : > { %v990_v25 = vsub.f32 %v2166_v19, %v989_v24 }
 0x71e   : > { %v991_v26 = vsel %vm543_vm0, %v990_v25, 0.0 }
 0x71f   : > { %v992_v27 = vmul.f32 %v991_v26, %v991_v26 }
 0x721   : > { %993 = vadd.xlane.f32.xlu2 %v992_v27 }
 0x794   : > { %v994_v35 = vpop.xlane.xlu2 %993 }
 0x795   : > { %v995_v1 = vmul.f32 0.03125, %v994_v35 }
 0x797   : > { %v996_v37 = vadd.f32 1e-05, %v995_v1 }
 0x799   : > { %1609 = vrsqrt.f32 %v996_v37  ;;  %vm1003_vm7 = vweird.f32 %v996_v37 }
 0x79f   : > { %v1610_v41 = vpop.eup %1609 }
 0x7a0   : > { %v998_v42 = vmul.f32 %v1610_v41, %v996_v37  ;;  %vm1004_vm6 = vweird.f32 %v1610_v41 }
 0x7a1   : > { %vm1005_vm8 = vmor %vm1003_vm7, %vm1004_vm6 }
 0x7a2   : > { %v999_v44 = vmul.f32 %v1610_v41, %v998_v42 }
 0x7a4   : > { %v1000_v45 = vmul.f32 0.5, %v999_v44 }
 0x7a6   : > { %v1001_v47 = vsub.f32 1.5, %v1000_v45 }
 0x7a8   : > { %v1002_v48 = vmul.f32 %v1610_v41, %v1001_v47 }
 0x7aa   : > { %v1006_v50 = vsel %vm1005_vm8, %v1610_v41, %v1002_v48 }
 0x7ab   : > { %v1007_v51 = vmul.f32 %v1006_v50, %v991_v26 }
 0x7ad   : > { %v1011_v53 = vmul.f32 %v1587_v49, %v1007_v51 }
 0x7af   : > { %v1015_v54 = vadd.f32 %v1588_v52, %v1011_v53 }
 0x7b1   : > { %v1016_v55 = vpack.c.bf16 %v1015_v54, %v1015_v54 }
 0x7b3   : > { %1093 = vmatmul.bf16.vlgmr.msrb.gmra.mxu3 %v1016_v55 }
 0x836   : > { %v1094_v59 = vpop.f32.mrf.mxu3 }
 0x837   : > { %v1095_v60 = vadd.f32 %v1589_v58, %v1094_v59 }
 0x839   : > { %v1098_v61 = vmax.f32 %v1095_v60, 0.0 }
 0x83b   : > { %v1099_v62 = vpack.c.bf16 %v1098_v61, %v1098_v61 }
 0x83d   : > { %1176 = vmatmul.bf16.vlgmr.msrb.gmra.mxu0 %v1099_v62 }
 0x83e   : > { %v1096_v63 = vpop.f32.mrf.mxu3 }
 0x8ba   : > { %v1177_v0 = vpop.f32.mrf.mxu0 }
 0x8bb   : > { %v1178_v3 = vadd.f32 %v1590_v38, %v1177_v0 }
 0x8bd   : > { %v1181_v4 = vadd.f32 %v1178_v3, %v2166_v19 }
 0x8bf   : > { %1182 = vst [vmem:[%s538_s20] sm:$0xff] %v1181_v4 }
 0x8c0   : > { %1818 = shalt.err (!%p1815_p9)
}
 0x8c1   : > { %1493 = dma.vmem_to_hbm [thread:$0]  (%p2047_p13), %s1197_s30, 128, %s1199_s29, %s1184_s15  }
 0x8c2   : > { %v1179_v5 = vpop.f32.mrf.mxu0 }
 0x8c3 PF: > { %s1210_s18 = sand.u32 1, %s1857_s25   ;;  %p2257_p10 = scmp.ge.s32.totalorder %s1869_s28, 2 }
 0x8c4   : > { %s1211_s11 = scalar_lea.sflag [#allocation4], %s1210_s18 }
 0x8c5   : > { %p1516_p11 = pnand %p2257_p10, %p2052_p5 }
 0x8c7   : > { %p1517_p0 = pneg %p1516_p11 }
 0x8c9   : > { %1852 = dma.done.wait (%p1517_p0), %s1211_s11, 128  }
 0x8ca   : > { %1854 = vsyncadd (%p1517_p0), %s1211_s11, 4294967168  ;;  %p29_p2 = scmp.ge.s32.totalorder %s2027_s17, 4   ;;  %s2258_s25 = smov %s1861_s26 }
 0x8cb   : > { %s2259_s26 = smov %s1865_s27  ;;  %s2260_s27 = smov %s2039_s23 }
 0x8cc   : > { %s2261_s28 = smov %s2027_s17  ;;  %31 = sbr.rel (!%p29_p2) target bundleno = 16 (0x10), region = 137 }
 0x8d1   :  { %1217 = vsyncpa [#allocation3], 1 }
 0x8d2   :  { %1219 = vsyncpa [#allocation3 + $0x1], 1 }
 0x8d3   :  { %1220 = vsyncpa [#allocation6], 1 }
 0x8d4   :  { %1221 = vsyncpa [#allocation9], 1 }
 0x8d5   :  { %1222 = vsyncpa [#allocation12], 1 }
 0x8d6   :  { %1223 = vsyncpa [#allocation4], 1 }
 0x8d7   :  { %1225 = vsyncpa [#allocation4 + $0x1], 1 }

</bundles_post_ra>
